<compile_context>
chip_gen: v6e
topology: v6e:2x2x1
jax: 0.10.0
libtpu: 0.0.40
codegen_flags: <defaults>
</compile_context>

<pallas_src>
import functools
import math

import jax
import jax.numpy as jnp
from jax import lax
from jax.experimental import pallas as pl
from jax.experimental.pallas import tpu as pltpu

_LANE = 128
_SUBLANE = 8


def _round_up(a, b):
    return (a + b - 1) // b * b


def _vmem_capacity_bytes():
    try:
        return int(pltpu.get_tpu_info().vmem_capacity_bytes)
    except Exception:
        return 64 << 20  # conservative default: v7x per-TensorCore VMEM


def _biaffine_kernel(x_ref, w_ref, y_ref, o_ref, xw_ref, *, n_out, d_y, sx_t):
    # x_ref : (1, Sx_t, Dx_pad)           bias-augmented, zero-padded x tile
    # w_ref : (Dx_pad, n_out * Dy_pad)    all output channels, resident in VMEM
    # y_ref : (1, Sy_t, Dy_pad)           bias-augmented, zero-padded y tile
    # o_ref : (1, n_out, Sx_t, Sy_t)
    # xw_ref: (n_out * Sx_t, Dy_pad)      scratch in activation dtype, carried
    #                                     across Sy tiles

    # Recompute x @ W only when moving to a new (batch, Sx-tile) slab,
    # i.e. when the innermost (Sy) grid index wraps back to 0.
    @pl.when(pl.program_id(2) == 0)
    def _():
        x = x_ref[0]                                       # (Sx_t, Dx_pad)
        for o in range(n_out):                             # small, unrolled
            xw = jnp.dot(x, w_ref[:, o * d_y:(o + 1) * d_y],
                         preferred_element_type=jnp.float32)
            # Keep the second-matmul operand in the native activation dtype
            # (bf16 stays on the fast MXU path); accumulation remains f32.
            xw_ref[o * sx_t:(o + 1) * sx_t, :] = xw.astype(xw_ref.dtype)

    y = y_ref[0]                                           # (Sy_t, Dy_pad)
    # One stacked matmul for ALL channels: contract Dy-vs-Dy directly
    # (no XLU transpose of y, no per-channel MXU fill/drain).
    s = lax.dot_general(xw_ref[...], y, (((1,), (1,)), ((), ())),
                        preferred_element_type=jnp.float32)
    o_ref[0] = s.reshape(n_out, sx_t, y.shape[0]).astype(o_ref.dtype)


def _augment_and_pad(t, s_pad, d_pad, bias):
    """[B, S, n_in] -> [B, s_pad, d_pad] with an appended ones column (if
    requested); padding uses a single fusable pad op."""
    if bias:
        t = jnp.concatenate([t, jnp.ones_like(t[..., :1])], axis=-1)
    _, S, D = t.shape
    if S != s_pad or D != d_pad:
        t = jnp.pad(t, ((0, 0), (0, s_pad - S), (0, d_pad - D)))
    return t


@functools.partial(jax.jit,
                   static_argnames=("bias_x", "bias_y", "tile_sx", "tile_sy"))
def biaffine_forward(x, y, weight, *, bias_x=True, bias_y=True,
                     tile_sx=None, tile_sy=None):
    """Pallas equivalent of Biaffine.forward.

    x:      [B, Sx, n_in]
    y:      [B, Sy, n_in]
    weight: [n_out, n_in + bias_x, n_in + bias_y]
    returns [B, Sx, Sy, n_out]   (== torch einsum 'bxi,oij,byj->boxy' + permute)
    """
    B, Sx, n_in = x.shape
    _, Sy, _ = y.shape
    n_out, Dx, Dy = weight.shape
    assert Dx == n_in + int(bias_x) and Dy == n_in + int(bias_y)

    itemsize = jnp.dtype(x.dtype).itemsize
    vmem_cap = _vmem_capacity_bytes()
    vmem_budget = int(0.75 * vmem_cap)

    # Generation-aware tile defaults: big tiles on 128 MiB parts (v5e/v6e),
    # smaller on 64 MiB v7x.  The shrink loop below enforces the budget anyway.
    if tile_sx is None:
        tile_sx = 1024 if vmem_cap >= (96 << 20) else 512
    if tile_sy is None:
        tile_sy = 1024 if vmem_cap >= (96 << 20) else 512

    # Lane-aligned feature dims; the bias column lives inside the padded D.
    Dx_pad = _round_up(Dx, _LANE)
    Dy_pad = _round_up(Dy, _LANE)

    # Sequence tiling: Sx on sublanes, Sy on the output lane axis (padded to a
    # multiple of 128 even for tiny Sy so stores are never masked).
    Sx_tile = min(tile_sx, _round_up(Sx, _SUBLANE))
    Sy_tile = min(tile_sy, _round_up(Sy, _LANE))

    # v7x megacore: make sure there are at least 2 parallel (b, Sx-slab) work
    # items so both TensorCores get work.
    while B * pl.cdiv(_round_up(Sx, _SUBLANE), Sx_tile) < 2 and Sx_tile >= 16:
        Sx_tile = _round_up(max(Sx_tile // 2, _SUBLANE), _SUBLANE)

    def _footprint(sx_t, sy_t):
        return ((2 * sx_t * Dx_pad                      # x block, double-buffered
                 + 2 * sy_t * Dy_pad                    # y block, double-buffered
                 + 2 * n_out * sx_t * sy_t              # out block, double-buffered
                 + Dx_pad * n_out * Dy_pad              # resident weight (1 buffer)
                 + n_out * sx_t * Dy_pad)               # xw scratch
                * itemsize)

    # Shrink tiles (Sy first, then Sx) until the footprint fits the budget.
    while _footprint(Sx_tile, Sy_tile) > vmem_budget:
        if Sy_tile > _LANE:
            Sy_tile = _round_up(max(Sy_tile // 2, _LANE), _LANE)
        elif Sx_tile > _SUBLANE:
            Sx_tile = _round_up(max(Sx_tile // 2, _SUBLANE), _SUBLANE)
        else:
            break
    # TODO(synk): for very large n_out (label-scoring heads with hundreds of
    # channels) the resident weight itself no longer fits; add an n_out grid
    # axis (tile w_all along its lane axis and the output along dim 1).

    Sx_pad = _round_up(Sx, Sx_tile)
    Sy_pad = _round_up(Sy, Sy_tile)

    x_aug = _augment_and_pad(x, Sx_pad, Dx_pad, bias_x)
    y_aug = _augment_and_pad(y, Sy_pad, Dy_pad, bias_y)

    # Zero-pad the weight and lay it out as one wide (Dx_pad, n_out*Dy_pad)
    # matrix (all output channels side by side along the lane axis).
    w_pad = jnp.zeros((n_out, Dx_pad, Dy_pad), weight.dtype)
    w_pad = w_pad.at[:, :Dx, :Dy].set(weight)
    w_all = jnp.transpose(w_pad, (1, 0, 2)).reshape(Dx_pad, n_out * Dy_pad)
    w_all = w_all.astype(x.dtype)   # deliberate: match activation precision

    grid = (B, Sx_pad // Sx_tile, Sy_pad // Sy_tile)
    kernel = functools.partial(_biaffine_kernel,
                               n_out=n_out, d_y=Dy_pad, sx_t=Sx_tile)

    flops = (2 * B * Sx_pad * Dx_pad * n_out * Dy_pad
             + 2 * B * n_out * Sx_pad * Sy_pad * Dy_pad)
    bytes_accessed = ((x_aug.size + y_aug.size + w_all.size) * itemsize
                      + B * n_out * Sx_pad * Sy_pad * itemsize)
    cost = pl.CostEstimate(flops=flops, transcendentals=0,
                           bytes_accessed=bytes_accessed)

    # Single-buffer the constant-index weight block (second buffer is waste).
    try:
        w_spec = pl.BlockSpec((Dx_pad, n_out * Dy_pad), lambda b, i, j: (0, 0),
                              pipeline_mode=pl.Buffered(1))
    except TypeError:
        w_spec = pl.BlockSpec((Dx_pad, n_out * Dy_pad), lambda b, i, j: (0, 0))

    fp = _footprint(Sx_tile, Sy_tile)
    vmem_limit = int(min(vmem_budget, max(2 * fp, 32 << 20)))

    out = pl.pallas_call(
        kernel,
        out_shape=jax.ShapeDtypeStruct((B, n_out, Sx_pad, Sy_pad), x.dtype),
        grid_spec=pltpu.PrefetchScalarGridSpec(
            num_scalar_prefetch=0,
            grid=grid,
            in_specs=[
                pl.BlockSpec((1, Sx_tile, Dx_pad), lambda b, i, j: (b, i, 0)),
                w_spec,
                pl.BlockSpec((1, Sy_tile, Dy_pad), lambda b, i, j: (b, j, 0)),
            ],
            out_specs=pl.BlockSpec((1, n_out, Sx_tile, Sy_tile),
                                   lambda b, i, j: (b, 0, i, j)),
            scratch_shapes=[pltpu.VMEM((n_out * Sx_tile, Dy_pad), x.dtype)],
        ),
        compiler_params=pltpu.CompilerParams(
            dimension_semantics=("parallel", "parallel", "arbitrary"),
            vmem_limit_bytes=vmem_limit),
        cost_estimate=cost,
    )(x_aug, w_all, y_aug)

    out = out[:, :, :Sx, :Sy]                 # drop sequence padding
    if n_out == 1:
        # [B, 1, Sx, Sy] -> [B, Sx, Sy, 1] is a pure (free) reshape.
        return out.reshape(B, Sx, Sy, 1)
    # TODO(synk): consumers that accept channel-first [B, n_out, Sx, Sy] should
    # take `out` directly and skip this HBM round-trip transpose.
    return jnp.transpose(out, (0, 2, 3, 1))


def make_biaffine_weight(key, n_in, n_out=1, bias_x=True, bias_y=True,
                         dtype=jnp.float32):
    """Deterministic xavier_normal_-style init for weight (n_out, n_in+bx, n_in+by)."""
    dx = n_in + int(bias_x)
    dy = n_in + int(bias_y)
    fan_in = dx * dy
    fan_out = n_out * dy
    std = math.sqrt(2.0 / (fan_in + fan_out))
    return std * jax.random.normal(key, (n_out, dx, dy), dtype=dtype)


def _reference(x, y, weight, bias_x=True, bias_y=True):
    if bias_x:
        x = jnp.concatenate([x, jnp.ones_like(x[..., :1])], axis=-1)
    if bias_y:
        y = jnp.concatenate([y, jnp.ones_like(y[..., :1])], axis=-1)
    s = jnp.einsum('bxi,oij,byj->boxy', x, weight, y)
    return jnp.transpose(s, (0, 2, 3, 1))


if __name__ == "__main__":
    key = jax.random.PRNGKey(0)
    kx, ky, kw, kx2, ky2, kw2, kx3, ky3, kw3 = jax.random.split(key, 9)

    # Case 1: square biaffine, n_out=2 (exercises the transpose path).
    B, S, n_in, n_out = 2, 8, 32, 2
    x = jax.random.normal(kx, (B, S, n_in), dtype=jnp.float32)
    y = jax.random.normal(ky, (B, S, n_in), dtype=jnp.float32)
    w = make_biaffine_weight(kw, n_in, n_out, True, True)
    out = jax.block_until_ready(biaffine_forward(x, y, w,
                                                 bias_x=True, bias_y=True))
    ref = _reference(x, y, w, True, True)
    assert out.shape == (B, S, S, n_out), out.shape
    assert jnp.allclose(out, ref, atol=1e-4, rtol=1e-4), "case1 mismatch"

    # Case 2: n_out=1, bias_y=False (non-square weight), Sx != Sy
    # (exercises the free-reshape path and asymmetric padding).
    B2, Sx2, Sy2, n_in2 = 2, 8, 16, 32
    x2 = jax.random.normal(kx2, (B2, Sx2, n_in2), dtype=jnp.float32)
    y2 = jax.random.normal(ky2, (B2, Sy2, n_in2), dtype=jnp.float32)
    w2 = make_biaffine_weight(kw2, n_in2, 1, True, False)
    out2 = jax.block_until_ready(biaffine_forward(x2, y2, w2,
                                                  bias_x=True, bias_y=False))
    ref2 = _reference(x2, y2, w2, True, False)
    assert out2.shape == (B2, Sx2, Sy2, 1), out2.shape
    assert jnp.allclose(out2, ref2, atol=1e-4, rtol=1e-4), "case2 mismatch"

    # Case 3: bf16 activations, n_out=5 (exercises the bf16 MXU path and the
    # stacked multi-channel second contraction).
    B3, Sx3, Sy3, n_in3, n_out3 = 2, 16, 16, 32, 5
    x3 = jax.random.normal(kx3, (B3, Sx3, n_in3), dtype=jnp.float32).astype(jnp.bfloat16)
    y3 = jax.random.normal(ky3, (B3, Sy3, n_in3), dtype=jnp.float32).astype(jnp.bfloat16)
    w3 = make_biaffine_weight(kw3, n_in3, n_out3, True, True)
    out3 = jax.block_until_ready(biaffine_forward(x3, y3, w3,
                                                  bias_x=True, bias_y=True))
    # Reference with the same bf16-rounded operands, accumulated in f32.
    ref3 = _reference(x3.astype(jnp.float32), y3.astype(jnp.float32),
                      w3.astype(jnp.bfloat16).astype(jnp.float32), True, True)
    assert out3.shape == (B3, Sx3, Sy3, n_out3), out3.shape
    assert jnp.allclose(out3.astype(jnp.float32), ref3, atol=5e-2, rtol=5e-2), \
        "case3 mismatch"

    print("KERNEL_OK")
</pallas_src>

<mosaic_0001>
module attributes {stable_mosaic.version = 11 : i64} {
  func.func @_biaffine_kernel(%arg0: i32, %arg1: i32, %arg2: i32, %arg3: memref<1x8x128xf32, #tpu.memory_space<vmem>>, %arg4: memref<128x256xf32, #tpu.memory_space<vmem>>, %arg5: memref<1x128x128xf32, #tpu.memory_space<vmem>>, %arg6: memref<1x2x8x128xf32, #tpu.memory_space<vmem>>, %arg7: memref<16x128xf32, #tpu.memory_space<vmem>>) attributes {dimension_semantics = [#tpu.dimension_semantics<parallel>, #tpu.dimension_semantics<parallel>, #tpu.dimension_semantics<arbitrary>], iteration_bounds = array<i64: 2, 1, 1>, scalar_prefetch = 0 : i64, scratch_operands = 1 : i64, tpu.core_type = #tpu.core_type<tc>, window_params = [{transform_indices = @transform_0, window_bounds = array<i64: 1, 8, 128>}, {pipeline_mode = #tpu.pipeline_mode<synchronous>, transform_indices = @transform_1, window_bounds = array<i64: 128, 256>}, {transform_indices = @transform_2, window_bounds = array<i64: 1, 128, 128>}, {transform_indices = @transform_3, window_bounds = array<i64: 1, 2, 8, 128>}]} {
    %c0_i32 = arith.constant 0 : i32
    %0 = arith.cmpi eq, %arg2, %c0_i32 : i32
    %1 = arith.extui %0 : i1 to i32
    %c0_i32_0 = arith.constant 0 : i32
    %2 = arith.cmpi ne, %1, %c0_i32_0 : i32
    scf.if %2 {
      %c0_9 = arith.constant 0 : index
      %c0_10 = arith.constant 0 : index
      %c0_11 = arith.constant 0 : index
      %11 = vector.load %arg3[%c0_9, %c0_10, %c0_11] : memref<1x8x128xf32, #tpu.memory_space<vmem>>, vector<1x8x128xf32>
      %12 = vector.shape_cast %11 : vector<1x8x128xf32> to vector<8x128xf32>
      %c0_12 = arith.constant 0 : index
      %c0_13 = arith.constant 0 : index
      %13 = vector.load %arg4[%c0_12, %c0_13] : memref<128x256xf32, #tpu.memory_space<vmem>>, vector<128x128xf32>
      %cst_14 = arith.constant dense<0.000000e+00> : vector<8x128xf32>
      %14 = tpu.matmul %12, %13, %cst_14 {dimension_numbers = #tpu.dot_dimension_numbers<[1], [0], [0], [1], [0, 0, 1, 1], [], []>} : vector<8x128xf32>, vector<128x128xf32>, vector<8x128xf32> -> vector<8x128xf32>
      %c0_15 = arith.constant 0 : index
      %c0_16 = arith.constant 0 : index
      %15 = vector.load %arg7[%c0_15, %c0_16] : memref<16x128xf32, #tpu.memory_space<vmem>>, vector<8x128xf32>
      tpu.vector_store %arg7[%c0_15, %c0_16], %14 {strides = array<i32>} : memref<16x128xf32, #tpu.memory_space<vmem>>, vector<8x128xf32>,
      %c0_17 = arith.constant 0 : index
      %c128 = arith.constant 128 : index
      %16 = vector.load %arg4[%c0_17, %c128] : memref<128x256xf32, #tpu.memory_space<vmem>>, vector<128x128xf32>
      %cst_18 = arith.constant dense<0.000000e+00> : vector<8x128xf32>
      %17 = tpu.matmul %12, %16, %cst_18 {dimension_numbers = #tpu.dot_dimension_numbers<[1], [0], [0], [1], [0, 0, 1, 1], [], []>} : vector<8x128xf32>, vector<128x128xf32>, vector<8x128xf32> -> vector<8x128xf32>
      %c8 = arith.constant 8 : index
      %c0_19 = arith.constant 0 : index
      %18 = vector.load %arg7[%c8, %c0_19] : memref<16x128xf32, #tpu.memory_space<vmem>>, vector<8x128xf32>
      tpu.vector_store %arg7[%c8, %c0_19], %17 {strides = array<i32>} : memref<16x128xf32, #tpu.memory_space<vmem>>, vector<8x128xf32>,
    } else {
    }
    %c0 = arith.constant 0 : index
    %c0_1 = arith.constant 0 : index
    %c0_2 = arith.constant 0 : index
    %3 = vector.load %arg5[%c0, %c0_1, %c0_2] : memref<1x128x128xf32, #tpu.memory_space<vmem>>, vector<1x128x128xf32>
    %4 = vector.shape_cast %3 : vector<1x128x128xf32> to vector<128x128xf32>
    %c0_3 = arith.constant 0 : index
    %c0_4 = arith.constant 0 : index
    %5 = vector.load %arg7[%c0_3, %c0_4] : memref<16x128xf32, #tpu.memory_space<vmem>>, vector<16x128xf32>
    %cst = arith.constant dense<0.000000e+00> : vector<16x128xf32>
    %6 = tpu.matmul %5, %4, %cst {dimension_numbers = #tpu.dot_dimension_numbers<[1], [1], [0], [0], [0, 0, 1, 0], [], []>} : vector<16x128xf32>, vector<128x128xf32>, vector<16x128xf32> -> vector<16x128xf32>
    %7 = vector.shape_cast %6 : vector<16x128xf32> to vector<2x8x128xf32>
    %c0_5 = arith.constant 0 : index
    %c0_6 = arith.constant 0 : index
    %c0_7 = arith.constant 0 : index
    %c0_8 = arith.constant 0 : index
    %8 = vector.load %arg6[%c0_5, %c0_6, %c0_7, %c0_8] : memref<1x2x8x128xf32, #tpu.memory_space<vmem>>, vector<1x2x8x128xf32>
    %9 = vector.shape_cast %8 : vector<1x2x8x128xf32> to vector<2x8x128xf32>
    %10 = vector.shape_cast %7 : vector<2x8x128xf32> to vector<1x2x8x128xf32>
    tpu.vector_store %arg6[%c0_5, %c0_6, %c0_7, %c0_8], %10 {strides = array<i32>} : memref<1x2x8x128xf32, #tpu.memory_space<vmem>>, vector<1x2x8x128xf32>,
    return
  }
  func.func @transform_0(%arg0: i32, %arg1: i32, %arg2: i32) -> (i32, i32, i32) {
    %c0_i32 = arith.constant 0 : i32
    %c0_i32_0 = arith.constant 0 : i32
    return %arg0, %arg1, %c0_i32 : i32, i32, i32
  }
  func.func @transform_1(%arg0: i32, %arg1: i32, %arg2: i32) -> (i32, i32) {
    %c0_i32 = arith.constant 0 : i32
    %c0_i32_0 = arith.constant 0 : i32
    %c0_i32_1 = arith.constant 0 : i32
    return %c0_i32, %c0_i32_0 : i32, i32
  }
  func.func @transform_2(%arg0: i32, %arg1: i32, %arg2: i32) -> (i32, i32, i32) {
    %c0_i32 = arith.constant 0 : i32
    %c0_i32_0 = arith.constant 0 : i32
    return %arg0, %arg2, %c0_i32 : i32, i32, i32
  }
  func.func @transform_3(%arg0: i32, %arg1: i32, %arg2: i32) -> (i32, i32, i32, i32) {
    %c0_i32 = arith.constant 0 : i32
    %c0_i32_0 = arith.constant 0 : i32
    return %arg0, %c0_i32, %arg1, %arg2 : i32, i32, i32, i32
  }
}

</mosaic_0001>

<bundles_post_ra>
// kernel: biaffine_forward.1
= control target key start
LH: loop header
LB: loop body
LE: loop exit
PB: predicated region body
PF: predicated region fallthrough
CT: control target
= control target key end

     0   :  { %s878_s12 = smov 0   ;;  %s880_s13 = smov 0   ;;  %s1069_s0 = inlined_call_operand.vmem [shape: f32[2,8,128], index: 0, kind: input, shape index: {}]   ;;  %s1070_s1 = inlined_call_operand.vmem [shape: f32[128,256], index: 1, kind: input, shape index: {}]   ;;  %s1071_s2 = inlined_call_operand.vmem [shape: f32[2,128,128], index: 2, kind: input, shape index: {}]   ;;  %s1072_s3 = inlined_call_operand.vmem [shape: f32[2,2,8,128], index: 3, kind: output, shape index: {}]  }
   0x1   :  { %s882_s14 = smov 0  }
   0x2 LB: > { %s32_s15 = sadd.s32 1, %s850_s13  ;;  %p639_p0 = scmp.ge.s32.totalorder %s854_s14, 1  ;;  %s854_s14 = sphi %s882_s14, %s13_s14   ;;  %s850_s13 = sphi %s880_s13, %s1074_s13   ;;  %s846_s12 = sphi %s878_s12, %s1073_s12  }
   0x3   : > { %p34_p1 = scmp.ge.s32.totalorder %s32_s15, 2  ;;  %p181_p2 = scmp.lt.s32.totalorder %s854_s14, 3 }
   0x5   : > { %s1076_s15 = smov (%p34_p1, %s32_s15), 0  ;;  %p182_p3 = pnand %p639_p0, %p181_p2 }
   0x6   : > { %p222_p4 = scmp.lt.s32.totalorder (!%p182_p3), %s846_s12, 1 }
   0x7   : > { %185 = sbr.rel (%p182_p3) target bundleno = 466 (0x1d2), region = 32 }
   0xc   : > { %v270_v0 = vld [vmem:[%s1070_s1 + $0xf0] sm:$0xff]  ;;  %v856_v1 = vmov 0.0   ;;  %v269_v2 = vld [vmem:[%s1070_s1 + $0xe0] sm:$0xff]  ;;  %vm857_vm0 = vmmov 0   ;;  %s1078_s12 = smov (!%p222_p4, %s846_s12), 1  ;;  %v357_v24 = vld [vmem:[%s1070_s1 + $0xf8] sm:$0xff] }
   0xd   : > { %701 = vmatprep.subr.mxu1 %v856_v1  ;;  %733 = vmatprep.mubr.msk.f32.mxu1 %vm857_vm0, %v856_v1  ;;  %v268_v3 = vld [vmem:[%s1070_s1 + $0xd0] sm:$0xff]  ;;  %v267_v4 = vld [vmem:[%s1070_s1 + $0xc0] sm:$0xff]  ;;  %s647_s24 = sshll.u32 %s1078_s12, 7  ;;  %s640_s23 = sshll.u32 %s1078_s12, 3  ;;  %v356_v25 = vld [vmem:[%s1070_s1 + $0xe8] sm:$0xff] }
   0xe   : > { %702 = vmatpush3.msra.mxu1 %v270_v0  ;;  %v266_v5 = vld [vmem:[%s1070_s1 + $0xb0] sm:$0xff]  ;;  %s923_s29 = scalar_lea.vmem %s1071_s2, %s647_s24  ;;  %v265_v6 = vld [vmem:[%s1070_s1 + $0xa0] sm:$0xff]  ;;  %s228_s4 = scalar_lea.vmem %s1069_s0, %s640_s23  ;;  %v355_v27 = vld [vmem:[%s1070_s1 + $0xd8] sm:$0xff] }
   0xf   : > { %703 = vmatprep.subr.mxu1 %v856_v1  ;;  %v264_v7 = vld [vmem:[%s1070_s1 + $0x90] sm:$0xff]  ;;  %v444_v8 = vld [vmem:[%s923_s29 + $0x78] sm:$0xff]  ;;  %v263_v10 = vld [vmem:[%s1070_s1 + $0x80] sm:$0xff]  ;;  %s648_s21 = sshll.u32 %s1078_s12, 4 }
  0x10   : > { %704 = vmatpush3.msra.mxu1 %v269_v2  ;;  %v443_v9 = vld [vmem:[%s923_s29 + $0x70] sm:$0xff]  ;;  %771 = vmatprep.subr.mxu0 %v444_v8  ;;  %v442_v12 = vld [vmem:[%s923_s29 + $0x68] sm:$0xff]  ;;  %v261_v13 = vld [vmem:[%s1070_s1 + $0x60] sm:$0xff]  ;;  %s249_s24 = scalar_lea.vmem %s1072_s3, %s648_s21 }
  0x11   : > { %705 = vmatprep.subr.mxu1 %v856_v1  ;;  %772 = vmatpush3.xpose.msra.mxu0 %v444_v8  ;;  %v262_v11 = vld [vmem:[%s1070_s1 + $0x70] sm:$0xff]  ;;  %v441_v15 = vld [vmem:[%s923_s29 + $0x60] sm:$0xff]  ;;  %v440_v18 = vld [vmem:[%s923_s29 + $0x58] sm:$0xff] }
  0x12   : > { %706 = vmatpush3.msra.mxu1 %v268_v3  ;;  %773 = vmatprep.subr.mxu0 %v443_v9  ;;  %v260_v14 = vld [vmem:[%s1070_s1 + $0x50] sm:$0xff]  ;;  %v259_v16 = vld [vmem:[%s1070_s1 + $0x40] sm:$0xff]  ;;  %v438_v26 = vld [vmem:[%s923_s29 + $0x48] sm:$0xff] }
  0x13   : > { %707 = vmatprep.subr.mxu1 %v856_v1  ;;  %v258_v17 = vld [vmem:[%s1070_s1 + $0x30] sm:$0xff]  ;;  %v257_v19 = vld [vmem:[%s1070_s1 + $0x20] sm:$0xff]  ;;  %v354_v28 = vld [vmem:[%s1070_s1 + $0xc8] sm:$0xff] }
  0x14   : > { %708 = vmatpush3.msra.mxu1 %v267_v4  ;;  %v256_v20 = vld [vmem:[%s1070_s1 + $0x10] sm:$0xff]  ;;  %v255_v22 = vld [vmem:[%s1070_s1] sm:$0xff]  ;;  %v353_v30 = vld [vmem:[%s1070_s1 + $0xb8] sm:$0xff] }
  0x15   : > { %709 = vmatprep.subr.mxu1 %v856_v1  ;;  %774 = vmatpush3.xpose.msra.mxu0 %v443_v9  ;;  %v439_v21 = vld [vmem:[%s923_s29 + $0x50] sm:$0xff]  ;;  %v254_v23 = vld [vmem:[%s228_s4] sm:$0xff]  ;;  %v352_v31 = vld [vmem:[%s1070_s1 + $0xa8] sm:$0xff] }
  0x16   : > { %710 = vmatpush3.msra.mxu1 %v266_v5  ;;  %775 = vmatprep.subr.mxu0 %v442_v12  ;;  %v437_v29 = vld [vmem:[%s923_s29 + $0x40] sm:$0xff]  ;;  %v351_v32 = vld [vmem:[%s1070_s1 + $0x98] sm:$0xff]  ;;  %v350_v33 = vld [vmem:[%s1070_s1 + $0x88] sm:$0xff] }
  0x17   : > { %711 = vmatprep.subr.mxu1 %v856_v1  ;;  %v349_v34 = vld [vmem:[%s1070_s1 + $0x78] sm:$0xff]  ;;  %v348_v35 = vld [vmem:[%s1070_s1 + $0x68] sm:$0xff]  ;;  %v435_v43 = vld [vmem:[%s923_s29 + $0x30] sm:$0xff] }
  0x18   : > { %712 = vmatpush3.msra.mxu1 %v265_v6  ;;  %v347_v36 = vld [vmem:[%s1070_s1 + $0x58] sm:$0xff]  ;;  %v346_v37 = vld [vmem:[%s1070_s1 + $0x48] sm:$0xff]  ;;  %v433_v45 = vld [vmem:[%s923_s29 + $0x20] sm:$0xff] }
  0x19   : > { %713 = vmatprep.subr.mxu1 %v856_v1  ;;  %776 = vmatpush3.xpose.msra.mxu0 %v442_v12  ;;  %v345_v38 = vld [vmem:[%s1070_s1 + $0x38] sm:$0xff]  ;;  %v344_v39 = vld [vmem:[%s1070_s1 + $0x28] sm:$0xff]  ;;  %v431_v47 = vld [vmem:[%s923_s29 + $0x10] sm:$0xff] }
  0x1a   : > { %714 = vmatpush3.msra.mxu1 %v264_v7  ;;  %777 = vmatprep.subr.mxu0 %v441_v15  ;;  %v343_v40 = vld [vmem:[%s1070_s1 + $0x18] sm:$0xff]  ;;  %v342_v41 = vld [vmem:[%s1070_s1 + $0x8] sm:$0xff]  ;;  %v429_v49 = vld [vmem:[%s923_s29] sm:$0xff] }
  0x1b   : > { %715 = vmatprep.subr.mxu1 %v856_v1  ;;  %v436_v42 = vld [vmem:[%s923_s29 + $0x38] sm:$0xff]  ;;  %v434_v44 = vld [vmem:[%s923_s29 + $0x28] sm:$0xff] }
  0x1c   : > { %716 = vmatpush3.msra.mxu1 %v263_v10  ;;  %v432_v46 = vld [vmem:[%s923_s29 + $0x18] sm:$0xff]  ;;  %v430_v48 = vld [vmem:[%s923_s29 + $0x8] sm:$0xff] }
  0x1d   : > { %717 = vmatprep.subr.mxu1 %v856_v1  ;;  %778 = vmatpush3.xpose.msra.mxu0 %v441_v15 }
  0x1e   : > { %718 = vmatpush3.msra.mxu1 %v262_v11  ;;  %779 = vmatprep.subr.mxu0 %v440_v18 }
  0x1f   : > { %719 = vmatprep.subr.mxu1 %v856_v1 }
  0x20   : > { %720 = vmatpush3.msra.mxu1 %v261_v13 }
  0x21   : > { %721 = vmatprep.subr.mxu1 %v856_v1  ;;  %780 = vmatpush3.xpose.msra.mxu0 %v440_v18 }
  0x22   : > { %722 = vmatpush3.msra.mxu1 %v260_v14  ;;  %781 = vmatprep.subr.mxu0 %v439_v21 }
  0x23   : > { %723 = vmatprep.subr.mxu1 %v856_v1 }
  0x24   : > { %724 = vmatpush3.msra.mxu1 %v259_v16 }
  0x25   : > { %725 = vmatprep.subr.mxu1 %v856_v1  ;;  %782 = vmatpush3.xpose.msra.mxu0 %v439_v21 }
  0x26   : > { %726 = vmatpush3.msra.mxu1 %v258_v17  ;;  %783 = vmatprep.subr.mxu0 %v438_v26 }
  0x27   : > { %727 = vmatprep.subr.mxu1 %v856_v1 }
  0x28   : > { %728 = vmatpush3.msra.mxu1 %v257_v19 }
  0x29   : > { %729 = vmatprep.subr.mxu1 %v856_v1  ;;  %784 = vmatpush3.xpose.msra.mxu0 %v438_v26 }
  0x2a   : > { %730 = vmatpush3.msra.mxu1 %v256_v20  ;;  %785 = vmatprep.subr.mxu0 %v437_v29 }
  0x2b   : > { %731 = vmatprep.subr.mxu1 %v856_v1 }
  0x2c   : > { %732 = vmatpush3.msra.mxu1 %v255_v22 }
  0x2d   : > { %734 = vmatmul.mubr.f32.vlgmr.msra.gmra.mxu1 %v254_v23  ;;  %736 = vmatprep.subr.mxu1 %v856_v1 }
  0x2e   : > { %737 = vmatpush3.msra.mxu1 %v357_v24  ;;  %768 = vmatprep.mubr.msk.f32.mxu1 %vm857_vm0, %v856_v1 }
  0x2f   : > { %738 = vmatprep.subr.mxu1 %v856_v1  ;;  %786 = vmatpush3.xpose.msra.mxu0 %v437_v29 }
  0x30   : > { %739 = vmatpush3.msra.mxu1 %v356_v25  ;;  %787 = vmatprep.subr.mxu0 %v436_v42 }
  0x31   : > { %740 = vmatprep.subr.mxu1 %v856_v1 }
  0x32   : > { %741 = vmatpush3.msra.mxu1 %v355_v27 }
  0x33   : > { %742 = vmatprep.subr.mxu1 %v856_v1  ;;  %788 = vmatpush3.xpose.msra.mxu0 %v436_v42 }
  0x34   : > { %743 = vmatpush3.msra.mxu1 %v354_v28  ;;  %789 = vmatprep.subr.mxu0 %v435_v43 }
  0x35   : > { %744 = vmatprep.subr.mxu1 %v856_v1 }
  0x36   : > { %745 = vmatpush3.msra.mxu1 %v353_v30 }
  0x37   : > { %746 = vmatprep.subr.mxu1 %v856_v1  ;;  %790 = vmatpush3.xpose.msra.mxu0 %v435_v43 }
  0x38   : > { %747 = vmatpush3.msra.mxu1 %v352_v31  ;;  %791 = vmatprep.subr.mxu0 %v434_v44 }
  0x39   : > { %748 = vmatprep.subr.mxu1 %v856_v1 }
  0x3a   : > { %749 = vmatpush3.msra.mxu1 %v351_v32 }
  0x3b   : > { %750 = vmatprep.subr.mxu1 %v856_v1  ;;  %792 = vmatpush3.xpose.msra.mxu0 %v434_v44 }
  0x3c   : > { %751 = vmatpush3.msra.mxu1 %v350_v33  ;;  %793 = vmatprep.subr.mxu0 %v433_v45 }
  0x3d   : > { %752 = vmatprep.subr.mxu1 %v856_v1 }
  0x3e   : > { %753 = vmatpush3.msra.mxu1 %v349_v34 }
  0x3f   : > { %754 = vmatprep.subr.mxu1 %v856_v1  ;;  %794 = vmatpush3.xpose.msra.mxu0 %v433_v45 }
  0x40   : > { %755 = vmatpush3.msra.mxu1 %v348_v35  ;;  %795 = vmatprep.subr.mxu0 %v432_v46 }
  0x41   : > { %756 = vmatprep.subr.mxu1 %v856_v1 }
  0x42   : > { %757 = vmatpush3.msra.mxu1 %v347_v36 }
  0x43   : > { %758 = vmatprep.subr.mxu1 %v856_v1  ;;  %796 = vmatpush3.xpose.msra.mxu0 %v432_v46 }
  0x44   : > { %759 = vmatpush3.msra.mxu1 %v346_v37  ;;  %797 = vmatprep.subr.mxu0 %v431_v47 }
  0x45   : > { %760 = vmatprep.subr.mxu1 %v856_v1 }
  0x46   : > { %761 = vmatpush3.msra.mxu1 %v345_v38 }
  0x47   : > { %762 = vmatprep.subr.mxu1 %v856_v1  ;;  %798 = vmatpush3.xpose.msra.mxu0 %v431_v47 }
  0x48   : > { %763 = vmatpush3.msra.mxu1 %v344_v39  ;;  %799 = vmatprep.subr.mxu0 %v430_v48 }
  0x49   : > { %764 = vmatprep.subr.mxu1 %v856_v1 }
  0x4a   : > { %765 = vmatpush3.msra.mxu1 %v343_v40 }
  0x4b   : > { %766 = vmatprep.subr.mxu1 %v856_v1  ;;  %800 = vmatpush3.xpose.msra.mxu0 %v430_v48 }
  0x4c   : > { %767 = vmatpush3.msra.mxu1 %v342_v41  ;;  %801 = vmatprep.subr.mxu0 %v429_v49 }
  0x4d   : > { %769 = vmatmul.mubr.f32.vlgmr.msra.gmra.mxu1 %v254_v23 }
  0x4f   : > { %802 = vmatpush3.xpose.msra.mxu0 %v429_v49 }
  0xed   : > { %v337_v50 = vpop.f32.mrf.mxu1 }
  0xee   : > { %803 = vmatprep.mubr.f32.mxu0 %v337_v50 }
  0xef   : > { %v735_v51 = vpop.f32.mrf.mxu1 }
 0x10d   : > { %v424_v52 = vpop.f32.mrf.mxu1 }
 0x10e   : > { %804 = vmatmul.mubr.f32.vlgmr.msra.gmra.mxu0 %v424_v52 }
 0x10f   : > { %v770_v53 = vpop.f32.mrf.mxu1 }
 0x1ce   : > { %v805_v54 = vpop.f32.mrf.mxu0 }
 0x1cf   : > { %523 = vst [vmem:[%s249_s24 + $0x8] sm:$0xff] %v805_v54 }
 0x1d0   : > { %v513_v55 = vpop.f32.mrf.mxu0 }
 0x1d1   : > { %522 = vst [vmem:[%s249_s24] sm:$0xff] %v513_v55 }
 0x1d2 PF: > { %s13_s14 = sadd.s32 1, %s854_s14   ;;  %s1073_s12 = smov %s850_s13 }
 0x1d3   : > { %p10_p5 = scmp.ge.s32.totalorder %s13_s14, 4   ;;  %s1074_s13 = smov %s1076_s15 }
 0x1d5   :  { %12 = sbr.rel (!%p10_p5) target bundleno = 2 (0x2), region = 69 }

</bundles_post_ra>
